<compile_context>
chip_gen: v7x
topology: tpu7x:2x2x1
jax: 0.10.0
libtpu: 0.0.40
codegen_flags: <defaults>
</compile_context>

<pallas_src>
import math

import numpy as np
import jax
import jax.numpy as jnp
from jax.experimental import pallas as pl
from jax.experimental.pallas import tpu as pltpu


# ----------------------------------------------------------------------------
# Interp-matrix construction (PyTorch align_corners=True convention).
# ----------------------------------------------------------------------------
def _interp_matrix(out_size: int, in_size: int) -> np.ndarray:
    """1-D linear interpolation matrix, PyTorch align_corners=True convention."""
    m = np.zeros((out_size, in_size), np.float32)
    if out_size == 1 or in_size == 1:
        m[:, 0] = 1.0
        return m
    scale = (in_size - 1) / (out_size - 1)
    src = np.arange(out_size, dtype=np.float64) * scale
    lo = np.clip(np.floor(src).astype(np.int64), 0, in_size - 1)
    hi = np.clip(lo + 1, 0, in_size - 1)
    frac = (src - lo).astype(np.float32)
    rows = np.arange(out_size)
    np.add.at(m, (rows, lo), 1.0 - frac)
    np.add.at(m, (rows, hi), frac)
    return m


# ----------------------------------------------------------------------------
# Block-size selection with honest, per-generation VMEM accounting.
# ----------------------------------------------------------------------------
def _round_up(x: int, m: int) -> int:
    return ((x + m - 1) // m) * m


def _pad_bytes(shape, itemsize: int) -> int:
    """VMEM footprint of an array including (sublane, lane) tile padding."""
    if len(shape) < 2:
        n = 1
        for d in shape:
            n *= d
        return _round_up(max(n, 1) * itemsize, 4 * 128)
    lane = _round_up(shape[-1], 128)
    sub_mult = 8 * max(1, 4 // itemsize)          # bf16 packs 16 sublanes/vreg
    sub = _round_up(shape[-2], sub_mult)
    lead = 1
    for d in shape[:-2]:
        lead *= d
    return lead * sub * lane * itemsize


def _step_vmem_bytes(c_blk, h_blk, h_in, w_in, w_out, x_isz, comp_isz) -> int:
    """Everything resident for one grid step (conservative)."""
    b = 0
    b += 2 * _pad_bytes((c_blk, h_in, w_in), x_isz)       # x block, double-buffered
    b += 2 * _pad_bytes((h_blk, h_in), comp_isz)          # A_h row block, double-buffered
    b += 2 * _pad_bytes((w_in, w_out), comp_isz)          # A_w^T, double-buffered
    b += 3 * _pad_bytes((c_blk, h_blk, w_out), x_isz)     # out block (2x buf + store temp)
    b += _pad_bytes((c_blk, h_blk, w_in), comp_isz)       # height-interp VMEM scratch
    b += _pad_bytes((c_blk, h_blk, w_out), 4)             # f32 width-matmul result
    b += 2 * _pad_bytes((h_blk, w_in), 4)                 # per-channel f32 dot temps
    if comp_isz != x_isz:
        b += 2 * _pad_bytes((h_in, w_in), comp_isz)       # per-channel x casts
    return b


def _default_vmem_limit_bytes() -> int:
    """Per-generation VMEM limit: ~48 MiB on v7x (64 MiB/TC), ~96 MiB on v5e/v6e."""
    cap = None
    try:
        cap = int(pltpu.get_tpu_info().vmem_capacity_bytes)
    except Exception:
        cap = None
    if not cap or cap <= 0:
        cap = 64 * 1024 * 1024        # assume the smallest (v7x per-core VMEM)
    return max(32 * 1024 * 1024, min(100 * 1024 * 1024, (cap * 3) // 4))


def _choose_blocks(nc, h_in, w_in, h_out, w_out, x_isz, comp_isz,
                   budget_bytes, min_steps):
    """Pick (c_blk, h_blk): largest blocks that fit VMEM while keeping the grid
    at >= min_steps (pipelining + v7x megacore); h_blk is a multiple of 8 so
    in-kernel reshapes stay metadata-only."""
    h_full = _round_up(h_out, 8)
    h_cands = sorted({min(h_full, h) for h in (8, 16, 32, 64, 128, 256, 512, h_full)},
                     reverse=True)
    # c_blk capped at 32 to bound the unrolled per-channel loop.
    c_cands = sorted({min(nc, c) for c in (1, 2, 4, 8, 16, 32)}, reverse=True)

    best, best_key = None, None
    for h_blk in h_cands:
        for c_blk in c_cands:
            if _step_vmem_bytes(c_blk, h_blk, h_in, w_in, w_out,
                                x_isz, comp_isz) > budget_bytes:
                continue
            steps = pl.cdiv(nc, c_blk) * pl.cdiv(h_out, h_blk)
            meets = steps >= min_steps
            vol = c_blk * h_blk
            # Prefer configs that reach min_steps; among those, the largest
            # blocks (fewest steps).  If none reach it (tiny problem), prefer
            # the most steps.
            key = (1 if meets else 0, vol if meets else steps, vol)
            if best_key is None or key > best_key:
                best, best_key = (c_blk, h_blk), key
    if best is None:
        best = (1, 8)
    return best


# ----------------------------------------------------------------------------
# Kernel.
# ----------------------------------------------------------------------------
def _resize_kernel(x_ref, ah_ref, awt_ref, o_ref, xh_ref):
    c_blk, h_in, w_in = x_ref.shape
    h_blk = ah_ref.shape[0]
    w_out = awt_ref.shape[1]
    compute_dtype = xh_ref.dtype

    ah = ah_ref[...]            # (h_blk, h_in), factor already folded in
    awt = awt_ref[...]          # (w_in, w_out)

    # Height interpolation: plain 2-D MXU matmuls per channel into VMEM
    # scratch (no broadcast of A_h, no batched dot_general).
    for ci in range(c_blk):
        xc = x_ref[ci].astype(compute_dtype)                 # (h_in, w_in)
        xh_ref[ci] = jnp.dot(
            ah, xc, preferred_element_type=jnp.float32).astype(compute_dtype)

    # Width interpolation: ONE stacked MXU matmul over all c_blk*h_blk rows.
    # Reshapes are metadata-only because h_blk % 8 == 0.
    xh2d = xh_ref[...].reshape(c_blk * h_blk, w_in)
    out = jnp.dot(xh2d, awt, preferred_element_type=jnp.float32)
    o_ref[...] = out.reshape(c_blk, h_blk, w_out).astype(o_ref.dtype)


# ----------------------------------------------------------------------------
# Wrapper.
# ----------------------------------------------------------------------------
def resize_transform(x: jnp.ndarray, vel_resize: float, ndims: int = 2, *,
                     matmul_dtype=None, min_grid_steps: int = 8,
                     vmem_limit_bytes: int | None = None) -> jnp.ndarray:
    """Pallas implementation of ResizeTransform.forward for ndims=2 (NCHW)."""
    assert ndims == 2, "this kernel implements the bilinear (ndims=2) path"
    factor = 1.0 / vel_resize
    if factor == 1.0:
        return x

    n, c, h_in, w_in = x.shape
    # PyTorch: output size = floor(input_size * scale_factor), double arithmetic.
    h_out = int(math.floor(h_in * factor))
    w_out = int(math.floor(w_in * factor))

    if matmul_dtype is not None:
        compute_dtype = jnp.dtype(matmul_dtype)
    elif x.dtype == jnp.bfloat16:
        compute_dtype = jnp.dtype(jnp.bfloat16)
    else:
        compute_dtype = jnp.dtype(jnp.float32)

    # Fold the vector-field rescale into A_h; pre-transpose A_w -> (W_in, W_out).
    a_h = jnp.asarray(np.float32(factor) * _interp_matrix(h_out, h_in),
                      dtype=compute_dtype)                       # (H_out, H_in)
    a_wt = jnp.asarray(np.ascontiguousarray(_interp_matrix(w_out, w_in).T),
                       dtype=compute_dtype)                      # (W_in, W_out)

    nc = n * c
    xf = x.reshape(nc, h_in, w_in)

    if vmem_limit_bytes is None:
        vmem_limit_bytes = _default_vmem_limit_bytes()
    budget = max(8 * 1024 * 1024, int(vmem_limit_bytes) - 4 * 1024 * 1024)

    x_isz = jnp.dtype(x.dtype).itemsize
    comp_isz = compute_dtype.itemsize
    c_blk, h_blk = _choose_blocks(nc, h_in, w_in, h_out, w_out,
                                  x_isz, comp_isz, budget, min_grid_steps)

    grid = (pl.cdiv(nc, c_blk), pl.cdiv(h_out, h_blk))

    # NOTE: output last dim < 128 gives masked stores; padding W_out + a wrapper
    # slice would add a full extra HBM pass on the (larger) output, so it is not
    # done here (this kernel is HBM-bound on v5e/v6e at realistic sizes).
    out = pl.pallas_call(
        _resize_kernel,
        out_shape=jax.ShapeDtypeStruct((nc, h_out, w_out), x.dtype),
        grid_spec=pltpu.PrefetchScalarGridSpec(
            num_scalar_prefetch=0,
            grid=grid,
            in_specs=[
                # x block resident across the inner (H_out) grid axis: no re-DMA.
                pl.BlockSpec((c_blk, h_in, w_in), lambda i, j: (i, 0, 0)),
                pl.BlockSpec((h_blk, h_in), lambda i, j: (j, 0)),
                pl.BlockSpec((w_in, w_out), lambda i, j: (0, 0)),
            ],
            out_specs=pl.BlockSpec((c_blk, h_blk, w_out), lambda i, j: (i, j, 0)),
            scratch_shapes=[pltpu.VMEM((c_blk, h_blk, w_in), compute_dtype)],
        ),
        compiler_params=pltpu.CompilerParams(
            dimension_semantics=("parallel", "parallel"),
            vmem_limit_bytes=int(vmem_limit_bytes),
        ),
    )(xf, a_h, a_wt)
    return out.reshape(n, c, h_out, w_out)


# ----------------------------------------------------------------------------
# Pure-JAX reference and self-test.
# ----------------------------------------------------------------------------
def _reference(x, vel_resize):
    """Pure-JAX reference using the same separable align_corners=True formulation."""
    factor = 1.0 / vel_resize
    _, _, h_in, w_in = x.shape
    h_out = int(math.floor(h_in * factor))
    w_out = int(math.floor(w_in * factor))
    a_h = jnp.asarray(_interp_matrix(h_out, h_in))
    a_w = jnp.asarray(_interp_matrix(w_out, w_in))
    y = jnp.einsum("oh,nchw,pw->ncop", a_h, x.astype(jnp.float32), a_w)
    return (jnp.float32(factor) * y).astype(x.dtype)


if __name__ == "__main__":
    key = jax.random.PRNGKey(0)
    x = jax.random.normal(key, (2, 4, 16, 16), dtype=jnp.float32)

    # factor > 1 branch: rescale field then upsample x2.
    out = jax.block_until_ready(resize_transform(x, 0.5, ndims=2))
    assert out.shape == (2, 4, 32, 32), out.shape
    ref = _reference(x, 0.5)
    assert jnp.allclose(out, ref, atol=1e-5, rtol=1e-5), \
        float(jnp.max(jnp.abs(out - ref)))

    # factor < 1 branch: downsample x0.5 then rescale field.
    out_dn = jax.block_until_ready(resize_transform(x, 2.0, ndims=2))
    assert out_dn.shape == (2, 4, 8, 8), out_dn.shape
    ref_dn = _reference(x, 2.0)
    assert jnp.allclose(out_dn, ref_dn, atol=1e-5, rtol=1e-5), \
        float(jnp.max(jnp.abs(out_dn - ref_dn)))

    # Optional bf16 MXU-operand fast path (f32 accumulation): loose tolerance.
    out_bf = jax.block_until_ready(
        resize_transform(x, 0.5, ndims=2, matmul_dtype=jnp.bfloat16))
    assert float(jnp.max(jnp.abs(out_bf - ref))) < 0.25

    print("KERNEL_OK")
</pallas_src>

<mosaic_0001>
module attributes {stable_mosaic.version = 11 : i64} {
  func.func @_resize_kernel(%arg0: i32, %arg1: i32, %arg2: memref<1x16x16xf32, #tpu.memory_space<vmem>>, %arg3: memref<32x16xf32, #tpu.memory_space<vmem>>, %arg4: memref<16x32xf32, #tpu.memory_space<vmem>>, %arg5: memref<1x32x32xf32, #tpu.memory_space<vmem>>, %arg6: memref<1x32x16xf32, #tpu.memory_space<vmem>>) attributes {dimension_semantics = [#tpu.dimension_semantics<parallel>, #tpu.dimension_semantics<parallel>], iteration_bounds = array<i64: 8, 1>, scalar_prefetch = 0 : i64, scratch_operands = 1 : i64, tpu.core_type = #tpu.core_type<tc>, window_params = [{transform_indices = @transform_0, window_bounds = array<i64: 1, 16, 16>}, {transform_indices = @transform_1, window_bounds = array<i64: 32, 16>}, {pipeline_mode = #tpu.pipeline_mode<synchronous>, transform_indices = @transform_2, window_bounds = array<i64: 16, 32>}, {transform_indices = @transform_3, window_bounds = array<i64: 1, 32, 32>}]} {
    %c0 = arith.constant 0 : index
    %c0_0 = arith.constant 0 : index
    %0 = vector.load %arg3[%c0, %c0_0] : memref<32x16xf32, #tpu.memory_space<vmem>>, vector<32x16xf32>
    %c0_1 = arith.constant 0 : index
    %c0_2 = arith.constant 0 : index
    %1 = vector.load %arg4[%c0_1, %c0_2] : memref<16x32xf32, #tpu.memory_space<vmem>>, vector<16x32xf32>
    %c0_3 = arith.constant 0 : index
    %c0_4 = arith.constant 0 : index
    %c0_5 = arith.constant 0 : index
    %2 = vector.load %arg2[%c0_3, %c0_4, %c0_5] : memref<1x16x16xf32, #tpu.memory_space<vmem>>, vector<1x16x16xf32>
    %3 = vector.shape_cast %2 : vector<1x16x16xf32> to vector<16x16xf32>
    %cst = arith.constant dense<0.000000e+00> : vector<32x16xf32>
    %4 = tpu.matmul %0, %3, %cst {dimension_numbers = #tpu.dot_dimension_numbers<[1], [0], [0], [1], [0, 0, 1, 1], [], []>} : vector<32x16xf32>, vector<16x16xf32>, vector<32x16xf32> -> vector<32x16xf32>
    %c0_6 = arith.constant 0 : index
    %c0_7 = arith.constant 0 : index
    %c0_8 = arith.constant 0 : index
    %5 = vector.load %arg6[%c0_6, %c0_7, %c0_8] : memref<1x32x16xf32, #tpu.memory_space<vmem>>, vector<1x32x16xf32>
    %6 = vector.shape_cast %5 : vector<1x32x16xf32> to vector<32x16xf32>
    %7 = vector.shape_cast %4 : vector<32x16xf32> to vector<1x32x16xf32>
    tpu.vector_store %arg6[%c0_6, %c0_7, %c0_8], %7 {strides = array<i32>} : memref<1x32x16xf32, #tpu.memory_space<vmem>>, vector<1x32x16xf32>,
    %c0_9 = arith.constant 0 : index
    %c0_10 = arith.constant 0 : index
    %c0_11 = arith.constant 0 : index
    %8 = vector.load %arg6[%c0_9, %c0_10, %c0_11] : memref<1x32x16xf32, #tpu.memory_space<vmem>>, vector<1x32x16xf32>
    %9 = vector.shape_cast %8 : vector<1x32x16xf32> to vector<32x16xf32>
    %cst_12 = arith.constant dense<0.000000e+00> : vector<32x32xf32>
    %10 = tpu.matmul %9, %1, %cst_12 {dimension_numbers = #tpu.dot_dimension_numbers<[1], [0], [0], [1], [0, 0, 1, 1], [], []>} : vector<32x16xf32>, vector<16x32xf32>, vector<32x32xf32> -> vector<32x32xf32>
    %11 = vector.shape_cast %10 : vector<32x32xf32> to vector<1x32x32xf32>
    %c0_13 = arith.constant 0 : index
    %c0_14 = arith.constant 0 : index
    %c0_15 = arith.constant 0 : index
    %12 = vector.load %arg5[%c0_13, %c0_14, %c0_15] : memref<1x32x32xf32, #tpu.memory_space<vmem>>, vector<1x32x32xf32>
    tpu.vector_store %arg5[%c0_13, %c0_14, %c0_15], %11 {strides = array<i32>} : memref<1x32x32xf32, #tpu.memory_space<vmem>>, vector<1x32x32xf32>,
    return
  }
  func.func @transform_0(%arg0: i32, %arg1: i32) -> (i32, i32, i32) {
    %c0_i32 = arith.constant 0 : i32
    %c0_i32_0 = arith.constant 0 : i32
    %c0_i32_1 = arith.constant 0 : i32
    return %arg0, %c0_i32, %c0_i32_0 : i32, i32, i32
  }
  func.func @transform_1(%arg0: i32, %arg1: i32) -> (i32, i32) {
    %c0_i32 = arith.constant 0 : i32
    %c0_i32_0 = arith.constant 0 : i32
    return %arg1, %c0_i32 : i32, i32
  }
  func.func @transform_2(%arg0: i32, %arg1: i32) -> (i32, i32) {
    %c0_i32 = arith.constant 0 : i32
    %c0_i32_0 = arith.constant 0 : i32
    %c0_i32_1 = arith.constant 0 : i32
    return %c0_i32, %c0_i32_0 : i32, i32
  }
  func.func @transform_3(%arg0: i32, %arg1: i32) -> (i32, i32, i32) {
    %c0_i32 = arith.constant 0 : i32
    %c0_i32_0 = arith.constant 0 : i32
    return %arg0, %arg1, %c0_i32 : i32, i32, i32
  }
}

</mosaic_0001>

<bundles_post_ra>
// kernel: tpu_custom_call.1
= control target key start
LH: loop header
LB: loop body
LE: loop exit
PB: predicated region body
PF: predicated region fallthrough
CT: control target
= control target key end

     0   :  { %8 = vsyncpa [#allocation4], 0  ;;  %s1033_s0 = inlined_call_operand.hbm [shape: f32[8,16,16], index: 0, kind: input, shape index: {}]   ;;  %s1034_s1 = inlined_call_operand.vmem [shape: f32[32,16], index: 1, kind: input, shape index: {}]   ;;  %s1035_s2 = inlined_call_operand.vmem [shape: f32[16,32], index: 2, kind: input, shape index: {}]   ;;  %s1036_s3 = inlined_call_operand.hbm [shape: f32[8,32,32], index: 3, kind: output, shape index: {}]  }
   0x1   :  { %10 = vsyncpa [#allocation4 + $0x1], 0 }
   0x2   :  { %11 = vsyncpa [#allocation5], 0 }
   0x3   :  { %13 = vsyncpa [#allocation5 + $0x1], 0  ;;  %s829_s12 = smov 0   ;;  %s831_s13 = smov 0  }
   0x4   :  { %s833_s14 = smov 0   ;;  %s835_s15 = smov 0  }
   0x5   :  { %s837_s16 = smov 0   ;;  %s839_s17 = smov 0  }
   0x6 LB: > { %s557_s18 = sadd.s32 4294967295, %s801_s17   ;;  %s558_s19 = sadd.s32 4294967294, %s801_s17   ;;  %s801_s17 = sphi %s839_s17, %s19_s17   ;;  %s797_s16 = sphi %s837_s16, %s1050_s16   ;;  %s793_s15 = sphi %s835_s15, %s1049_s15   ;;  %s789_s14 = sphi %s833_s14, %s1048_s14   ;;  %s785_s13 = sphi %s831_s13, %s1047_s13   ;;  %s781_s12 = sphi %s829_s12, %s1046_s12  }
   0x7   : > { %s31_s20 = sadd.s32 1, %s797_s16  ;;  %s38_s21 = sadd.s32 1, %s789_s14 }
   0x8   : > { %p33_p0 = scmp.ge.s32.totalorder %s31_s20, 8  ;;  %p45_p1 = scmp.ne.s32.totalorder %s789_s14, %s785_s13 }
   0x9   : > { %p46_p2 = scmp.eq.s32.totalorder %s801_s17, 0  ;;  %p51_p3 = scmp.ne.s32.totalorder %s785_s13, %s781_s12 }
   0xa   : > { %s1052_s20 = smov (%p33_p0, %s31_s20), 0  ;;  %p52_p5 = scmp.eq.s32.totalorder %s557_s18, 0 }
   0xb   : > { %p870_p4 = por %p46_p2, %p45_p1  ;;  %s35_s23 = ssub.s32 %s797_s16, %s1052_s20 }
   0xc   : > { %p124_p6 = scmp.eq.s32.totalorder %s557_s18, 7  ;;  %p36_p7 = scmp.eq.s32.totalorder %s35_s23, 0 }
   0xd   : > { %p876_p8 = por %p52_p5, %p51_p3  ;;  %p130_p10 = scmp.eq.s32.totalorder %s558_s19, 7 }
   0xe   : > { %p880_p9 = por %p124_p6, %p45_p1  ;;  %p635_p12 = scmp.lt.s32.totalorder %s801_s17, 8 }
   0xf   : > { %s885_s26 = scalar_select %p36_p7, %s789_s14, %s38_s21  }
  0x10   : > { %s1040_s25 = scalar_select %p880_p9, 1, 0 }
  0x11   : > { %p887_p11 = por %p130_p10, %p51_p3  ;;  %s162_s28 = sand.u32 1, %s789_s14  }
  0x12   : > { %s562_s29 = sshll.u32 %s162_s28, 4  ;;  %s581_s30 = sshll.u32 %s797_s16, 8 }
  0x13   : > { %s1041_s27 = scalar_select %p887_p11, 1, 0 }
  0x14   : > { %s897_s6 = scalar_lea.hbm %s1033_s0, %s581_s30  ;;  %s166_s7 = scalar_lea.vmem [#allocation3], %s562_s29 }
  0x15   : > { %s173_s8 = sshll.u32 %s166_s7, 4  ;;  %p903_p13 = pnand %p635_p12, %p870_p4  ;;  %s899_s8 = int_to_ptr.vmem [resolvable:$true] %s173_s8 }
  0x16   : > { %s908_s10 = scalar_lea.sflag [#allocation4], %s162_s28  ;;  %s689_s11 = scalar_lea.hbm %s897_s6, 256 }
  0x17   : > { %p690_p1 = scmp.ne.s32.totalorder %s897_s6, %s689_s11  ;;  %p691_p2 = pneg %p903_p13 }
  0x18   : > { %s694_s21 = scalar_lea.hbm %s1033_s0, 2048  ;;  %p695_p4 = scmp.lt.u32.totalorder %s897_s6, %s1033_s0 }
  0x19   : > { %p692_p3 = pnand %p691_p2, %p690_p1  ;;  %p696_p6 = scmp.lt.u32.totalorder %s694_s21, %s689_s11 }
  0x1a   : > { %p698_p10 = scmp.lt.u32.totalorder %s689_s11, %s897_s6 }
  0x1b   : > { %p693_p5 = pneg %p692_p3  ;;  %p697_p7 = por %p696_p6, %p695_p4 }
  0x1d   : > { %p699_p12 = por %p698_p10, %p697_p7 }
  0x1f   : > { %p700_p0 = pnand %p699_p12, %p693_p5 }
  0x21   : > { %703 = shalt.err (!%p700_p0)
}
  0x22   : > { %s704_s28 = scalar_lea.vmem %s899_s8, 256  ;;  %s803_s29 = smov [#allocation3]  }
  0x23   : > { %p705_p1 = scmp.ne.s32.totalorder %s899_s8, %s704_s28  ;;  %s709_s30 = sshll.u32 %s803_s29, 4  ;;  %s710_s30 = int_to_ptr.vmem [resolvable:$false] %s709_s30 }
  0x24   : > { %s711_s4 = scalar_lea.vmem %s710_s30, 512  ;;  %p712_p9 = scmp.lt.s32.totalorder %s899_s8, %s710_s30 }
  0x25   : > { %p707_p3 = pnand %p705_p1, %p691_p2  ;;  %p713_p4 = scmp.lt.s32.totalorder %s711_s4, %s704_s28 }
  0x27   : > { %p708_p11 = pneg %p707_p3  ;;  %p714_p6 = por %p713_p4, %p712_p9 }
  0x29   : > { %p715_p7 = pnand %p714_p6, %p708_p11 }
  0x2b   : > { %718 = shalt.err (!%p715_p7)
}
  0x2c   : > { %s804_s5 = smov 128   ;;  %s805_s7 = smov 8  }
  0x2d   : > { %630 = dma.hbm_to_vmem [thread:$0]  (!%p903_p13), %s897_s6, 256, %s899_s8, %s908_s10, %s804_s5, %s804_s5, %s805_s7  }
  0x2e   : > { %p181_p0 = scmp.lt.s32.totalorder %s801_s17, 9  ;;  %p1043_p2 = scmp.ge.s32.totalorder %s801_s17, 1 }
  0x30   : > { %p182_p5 = pnand %p1043_p2, %p181_p0 }
  0x31   : > { %s940_s11 = sand.u32 (!%p182_p5), 1, %s785_s13  }
  0x32   : > { %185 = sbr.rel (%p182_p5) target bundleno = 519 (0x207), region = 32  ;;  %s566_s18 = sshll.u32 (!%p182_p5), %s940_s11, 4 }
  0x33   : > { %s188_s19 = scalar_lea.sflag (!%p182_p5), [#allocation4], %s940_s11  ;;  %s191_s21 = scalar_lea.vmem (!%p182_p5), [#allocation3], %s566_s18 }
  0x39   : > { %772 = dma.done.wait (%p876_p8), %s188_s19, 256  }
  0x3a   : > { %774 = vsyncadd (%p876_p8), %s188_s19, 4294967040  ;;  %vm234_vm0 = vcmask 130048   ;;  %v232_v0 = vld [vmem:[%s191_s21] sm:$0xff]  ;;  %v233_v1 = vld [vmem:[%s191_s21 + $0x8] sm:$0xff]  ;;  %s567_s7 = sshll.u32 %s940_s11, 5  ;;  %vm437_vm1 = vcmask 261120  }
  0x3b   : > { %v226_v2 = vld [vmem:[%s1034_s1] sm:$0xff]  ;;  %v615_v3 = vpack.c.bf16 %v233_v1, %v232_v0  ;;  %v227_v4 = vld [vmem:[%s1034_s1 + $0x8] sm:$0xff]  ;;  %v228_v5 = vld [vmem:[%s1034_s1 + $0x10] sm:$0xff]  ;;  %s218_s18 = scalar_lea.vmem [#allocation6], %s567_s7  ;;  %s582_s21 = sshll.u32 %s793_s15, 9 }
  0x3c   : > { %599 = vmatprep.mubr.msk.f32.mxu0 %vm234_vm0, %v226_v2  ;;  %v229_v6 = vld [vmem:[%s1034_s1 + $0x18] sm:$0xff]  ;;  %v230_v7 = vld [vmem:[%s1035_s2] sm:$0xff]  ;;  %v231_v8 = vld [vmem:[%s1035_s2 + $0x8] sm:$0xff]  ;;  %s458_s19 = sshll.u32 %s218_s18, 4  ;;  %s985_s9 = scalar_lea.hbm %s1036_s3, %s582_s21  ;;  %s980_s19 = int_to_ptr.vmem [resolvable:$true] %s458_s19 }
  0x3d   : > { %616 = vmatprep.subr.bf16.mxu0 %v615_v3  ;;  %v619_v9 = vpack.c.bf16 %v231_v8, %v230_v7  ;;  %s443_s10 = scalar_lea.sflag [#allocation5], %s940_s11  ;;  %s719_s22 = scalar_lea.vmem %s980_s19, 512 }
  0x3e   : > { %618 = vmatpush3.bf16.msra.mxu0 %v615_v3  ;;  %p720_p8 = scmp.ne.s32.totalorder %s980_s19, %s719_s22  ;;  %p1044_p9 = scmp.ne.s32.totalorder %s1040_s25, 0 }
  0x3f   : > { %620 = vmatprep.subr.bf16.mxu1 %v619_v9  ;;  %s806_s15 = smov [#allocation6]  }
  0x40   : > { %622 = vmatpush3.bf16.msra.mxu1 %v619_v9  ;;  %p721_p11 = pnand %p720_p8, %p1044_p9  ;;  %s723_s23 = sshll.u32 %s806_s15, 4  ;;  %s724_s23 = int_to_ptr.vmem [resolvable:$false] %s723_s23 }
  0x41   : > { %600 = vmatmul.mubr.msk.f32.vlgmr.msra.gmra.mrb[0].mxu0 %vm234_vm0, %v227_v4  ;;  %s725_s24 = scalar_lea.vmem %s724_s23, 1024  ;;  %p726_p10 = scmp.lt.s32.totalorder %s980_s19, %s724_s23 }
  0x42   : > { %602 = vmatprep.mubr.msk.f32.mxu0 %vm234_vm0, %v228_v5  ;;  %p722_p13 = pneg %p721_p11  ;;  %p727_p12 = scmp.lt.s32.totalorder %s725_s24, %s719_s22 }
  0x44   : > { %p728_p1 = por %p727_p12, %p726_p10 }
  0x45   : > { %603 = vmatmul.mubr.msk.f32.gmra.mrb[2].mxu0 %vm234_vm0, %v229_v6 }
  0x46   : > { %p729_p3 = pnand %p728_p1, %p722_p13 }
 0x114   : > { %v601_v10 = vpop.f32.mrb[0].mxu0 }
 0x115   : > { %333 = vst.msk [vmem:[#allocation2 + $0x8] sm:$0xff] %vm234_vm0, %v601_v10  ;;  %v313_v11 = vpop.f32.mrb[1].mxu0 }
 0x116   : > { %332 = vst.msk [vmem:[#allocation2] sm:$0xff] %vm234_vm0, %v313_v11 }
 0x118   : > { %v604_v12 = vpop.f32.mrb[2].mxu0 }
 0x119   : > { %335 = vst.msk [vmem:[#allocation2 + $0x18] sm:$0xff] %vm234_vm0, %v604_v12  ;;  %v323_v13 = vpop.f32.mrb[3].mxu0 }
 0x11a   : > { %334 = vst.msk [vmem:[#allocation2 + $0x10] sm:$0xff] %vm234_vm0, %v323_v13 }
 0x11c   : > { %v337_v15 = vld [vmem:[#allocation2 + $0x8] sm:$0xff] }
 0x11d   : > { %v336_v14 = vld [vmem:[#allocation2] sm:$0xff] }
 0x11e   : > { %609 = vmatprep.mubr.msk.f32.mxu1 %vm234_vm0, %v336_v14 }
 0x11f   : > { %610 = vmatmul.mubr.msk.f32.vlgmr.msra.gmra.mrb[0].mxu1 %vm234_vm0, %v337_v15 }
 0x120   : > { %v339_v17 = vld [vmem:[#allocation2 + $0x18] sm:$0xff] }
 0x121   : > { %v338_v16 = vld [vmem:[#allocation2 + $0x10] sm:$0xff] }
 0x122   : > { %612 = vmatprep.mubr.msk.f32.mxu1 %vm234_vm0, %v338_v16 }
 0x123   : > { %613 = vmatmul.mubr.msk.f32.gmra.mrb[2].mxu1 %vm234_vm0, %v339_v17 }
 0x1f2   : > { %v611_v18 = vpop.f32.mrb[0].mxu1 }
 0x1f3   : > { %439 = vst.msk [vmem:[%s218_s18 + $0x8] sm:$0xff] %vm437_vm1, %v611_v18  ;;  %v418_v19 = vpop.f32.mrb[1].mxu1 }
 0x1f4   : > { %438 = vst.msk [vmem:[%s218_s18] sm:$0xff] %vm437_vm1, %v418_v19 }
 0x1f6   : > { %v614_v20 = vpop.f32.mrb[2].mxu1 }
 0x1f7   : > { %441 = vst.msk [vmem:[%s218_s18 + $0x18] sm:$0xff] %vm437_vm1, %v614_v20  ;;  %v428_v21 = vpop.f32.mrb[3].mxu1 }
 0x1f8   : > { %440 = vst.msk [vmem:[%s218_s18 + $0x10] sm:$0xff] %vm437_vm1, %v428_v21 }
 0x1f9   : > { %732 = shalt.err (!%p729_p3)
}
 0x1fa   : > { %s733_s28 = scalar_lea.hbm %s985_s9, 512  ;;  %s737_s4 = scalar_lea.hbm %s1036_s3, 4096 }
 0x1fb   : > { %p734_p4 = scmp.ne.s32.totalorder %s985_s9, %s733_s28  ;;  %p738_p0 = scmp.lt.u32.totalorder %s985_s9, %s1036_s3 }
 0x1fc   : > { %p739_p2 = scmp.lt.u32.totalorder %s737_s4, %s733_s28  ;;  %p741_p8 = scmp.lt.u32.totalorder %s733_s28, %s985_s9 }
 0x1fd   : > { %p735_p6 = pnand %p734_p4, %p1044_p9 }
 0x1fe   : > { %p740_p5 = por %p739_p2, %p738_p0 }
 0x1ff   : > { %p736_p7 = pneg %p735_p6 }
 0x200   : > { %p742_p11 = por %p741_p8, %p740_p5 }
 0x202   : > { %p743_p13 = pnand %p742_p11, %p736_p7 }
 0x204   : > { %746 = shalt.err (!%p743_p13)
}
 0x205   : > { %s807_s18 = smov 128   ;;  %s808_s21 = smov 8  }
 0x206   : > { %625 = dma.vmem_to_hbm [thread:$0]  (%p1044_p9), %s980_s19, 512, %s985_s9, %s443_s10, %s807_s18, %s807_s18, %s808_s21  }
 0x207 PF: > { %p636_p10 = scmp.ge.s32.totalorder %s801_s17, 2  ;;  %s473_s6 = sand.u32 1, %s781_s12  }
 0x208   : > { %p1045_p12 = scmp.ne.s32.totalorder %s1041_s27, 0  ;;  %s474_s8 = scalar_lea.sflag [#allocation5], %s473_s6 }
 0x20a   : > { %p632_p1 = pnand %p636_p10, %p1045_p12 }
 0x20c   : > { %776 = dma.done.wait (!%p632_p1), %s474_s8, 512  }
 0x20d   : > { %778 = vsyncadd (!%p632_p1), %s474_s8, 4294966784  ;;  %s19_s17 = sadd.s32 1, %s801_s17   ;;  %s1046_s12 = smov %s785_s13 }
 0x20e   : > { %p16_p3 = scmp.ge.s32.totalorder %s19_s17, 10   ;;  %s1047_s13 = smov %s789_s14 }
 0x20f   : > { %s1048_s14 = smov %s885_s26  ;;  %s1049_s15 = smov %s797_s16 }
 0x210   : > { %s1050_s16 = smov %s1052_s20  ;;  %18 = sbr.rel (!%p16_p3) target bundleno = 6 (0x6), region = 80 }
 0x217   :  { %479 = vsyncpa [#allocation4], 1 }
 0x218   :  { %481 = vsyncpa [#allocation4 + $0x1], 1 }
 0x219   :  { %482 = vsyncpa [#allocation5], 1 }
 0x21a   :  { %484 = vsyncpa [#allocation5 + $0x1], 1 }

</bundles_post_ra>
